<compile_context>
chip_gen: v6e
topology: v6e:2x2x1
jax: 0.10.0
libtpu: 0.0.40
codegen_flags: <defaults>
</compile_context>

<pallas_src>
import functools

import jax
import jax.numpy as jnp
import numpy as np
from jax.experimental import pallas as pl
from jax.experimental.pallas import tpu as pltpu


# VMEM limit safe across generations: v7x has 64 MiB physical (32 MiB scoped
# default), v5e/v6e have 128 MiB. 48 MiB leaves headroom on v7x and raises the
# 32 MiB scoped default on v5e/v6e so batch tiles can be larger.
_VMEM_LIMIT_BYTES = 48 * 1024 * 1024
# Portion of the limit reserved for the double-buffered pipeline blocks.
_VMEM_BLOCK_BUDGET = 32 * 1024 * 1024
# Row loops with at most this many rows are unrolled (static indices); larger
# batch tiles use a rolled fori_loop to keep code size bounded.
_ROW_UNROLL = 16


def _for_each_row(n_rows, body):
    """Run body(b) for b in [0, n_rows)."""
    if n_rows <= _ROW_UNROLL:
        for b in range(n_rows):
            body(b)
    else:
        def _step(b, carry):
            body(b)
            return carry
        jax.lax.fori_loop(0, n_rows, _step, 0)


def _phrase_attention_kernel(*refs, renormalize: bool, has_mask: bool,
                             has_parent: bool, values_is_ctx: bool):
    i = 0
    qry_ref = refs[i]; i += 1            # (TB, D)
    ctx_ref = refs[i]; i += 1            # (TB, S, D)
    mask_ref = None
    if has_mask:
        mask_ref = refs[i]; i += 1       # (TB, S)
    parent_ref = None
    if has_parent:
        parent_ref = refs[i]; i += 1     # (TB, S)
    values_ref = ctx_ref                 # values is None -> reuse the ctx block
    if not values_is_ctx:
        values_ref = refs[i]; i += 1     # (TB, S, D)
    alphas_ref, summary_ref, scores_ref = refs[i], refs[i + 1], refs[i + 2]

    tb = qry_ref.shape[0]

    # --- DotAttComp: scores[b, s] = sum_d qry[b, d] * ctx[b, s, d] -----------
    # Per-row 2-D dots (M=1 MXU passes); acceptable since the kernel is
    # HBM-bound and compute hides under the pipelined block DMA.
    def _score_row(b):
        q_row = qry_ref[pl.ds(b, 1), :]                          # (1, D)
        c_b = ctx_ref[b]                                         # (S, D)
        row = jax.lax.dot_general(
            q_row, c_b, (((1,), (1,)), ((), ())),
            preferred_element_type=jnp.float32)                  # (1, S)
        scores_ref[pl.ds(b, 1), :] = row

    _for_each_row(tb, _score_row)

    scores = scores_ref[...]                                     # (TB, S)
    if has_mask:
        # == scores + log(mask) for a 0/1 mask, without the per-element log.
        scores = jnp.where(mask_ref[...] > 0.0, scores, -jnp.inf)
        scores_ref[...] = scores

    # --- softmax over the sequence axis (score_norm = Softmax(-1)) -----------
    m = jnp.max(scores, axis=-1, keepdims=True)
    e = jnp.exp(scores - m)
    denom = jnp.sum(e, axis=-1, keepdims=True)
    alphas = e * pl.reciprocal(denom, approx=True)

    # --- ParentOverlapFunction forward: elementwise min with parent alphas ---
    if has_parent:
        alphas = jnp.minimum(parent_ref[...], alphas)

    if renormalize:
        total = jnp.sum(alphas, axis=-1, keepdims=True)
        alphas = alphas * pl.reciprocal(total, approx=True)
    alphas_ref[...] = alphas

    # --- SumSummComp: summary[b, d] = sum_s alphas[b, s] * values[b, s, d] ---
    def _summary_row(b):
        a_row = alphas_ref[pl.ds(b, 1), :]                       # (1, S)
        v_b = values_ref[b]                                      # (S, D)
        row = jax.lax.dot_general(
            a_row, v_b, (((1,), (0,)), ((), ())),
            preferred_element_type=jnp.float32)                  # (1, D)
        summary_ref[pl.ds(b, 1), :] = row

    _for_each_row(tb, _summary_row)


def _choose_batch_tile(batch, seqlen, dim, *, values_is_ctx, has_mask,
                       has_parent, max_batch_tile=None,
                       vmem_budget=_VMEM_BLOCK_BUDGET):
    """Pick the number of batch rows per grid step from a VMEM budget."""
    f32 = 4
    stream = seqlen * dim * f32 * (1 if values_is_ctx else 2)    # ctx (+ values)
    small = (2 * dim + (2 + int(has_mask) + int(has_parent)) * seqlen) * f32
    per_row = 2 * (stream + small)          # x2: double-buffered pipeline blocks
    tb = max(1, int(vmem_budget) // per_row)
    if max_batch_tile is not None:
        tb = min(tb, int(max_batch_tile))
    tb = min(tb, batch)
    if tb < batch and tb % 8 != 0:
        # Sublane alignment: a partial batch tile must be a multiple of 8
        # (second-to-last block dim) unless it spans the whole batch.
        tb = min(batch, max(8, (tb // 8) * 8))
    return max(tb, 1)


def phrase_attention(qry, ctx, ctx_mask=None, parent_alphas=None, values=None,
                     renormalize=False, max_batch_tile=None):
    """Single PhraseAttention forward step.

    qry: (B, D), ctx: (B, S, D), ctx_mask: (B, S) or None,
    parent_alphas: (B, S) or None (None == all-ones parent, first decode step),
    values: (B, S, D) or None (None -> ctx is reused inside the kernel).
    Returns (alphas (B, S), summary (B, D), scores (B, S)).
    """
    B, S, D = ctx.shape
    values_is_ctx = values is None
    has_mask = ctx_mask is not None
    has_parent = parent_alphas is not None

    tb = _choose_batch_tile(B, S, D, values_is_ctx=values_is_ctx,
                            has_mask=has_mask, has_parent=has_parent,
                            max_batch_tile=max_batch_tile)
    num_tiles = pl.cdiv(B, tb)
    padded_b = num_tiles * tb
    pad = padded_b - B

    def _prep(x, fill=0.0):
        x = x.astype(jnp.float32)
        if pad:
            widths = ((0, pad),) + ((0, 0),) * (x.ndim - 1)
            x = jnp.pad(x, widths, constant_values=fill)
        return x

    inputs = [_prep(qry), _prep(ctx)]
    in_specs = [
        pl.BlockSpec((tb, D), lambda b: (b, 0)),            # qry
        pl.BlockSpec((tb, S, D), lambda b: (b, 0, 0)),      # ctx
    ]
    if has_mask:
        # Pad rows fully unmasked so padded rows stay NaN-free.
        inputs.append(_prep(ctx_mask, fill=1.0))
        in_specs.append(pl.BlockSpec((tb, S), lambda b: (b, 0)))
    if has_parent:
        inputs.append(_prep(parent_alphas, fill=1.0))
        in_specs.append(pl.BlockSpec((tb, S), lambda b: (b, 0)))
    if not values_is_ctx:
        inputs.append(_prep(values))
        in_specs.append(pl.BlockSpec((tb, S, D), lambda b: (b, 0, 0)))

    out_shape = (
        jax.ShapeDtypeStruct((padded_b, S), jnp.float32),   # alphas
        jax.ShapeDtypeStruct((padded_b, D), jnp.float32),   # summary
        jax.ShapeDtypeStruct((padded_b, S), jnp.float32),   # scores
    )
    out_specs = [
        pl.BlockSpec((tb, S), lambda b: (b, 0)),
        pl.BlockSpec((tb, D), lambda b: (b, 0)),
        pl.BlockSpec((tb, S), lambda b: (b, 0)),
    ]

    kernel = functools.partial(
        _phrase_attention_kernel, renormalize=bool(renormalize),
        has_mask=has_mask, has_parent=has_parent, values_is_ctx=values_is_ctx)

    # Advisory cost hint for XLA's scheduler around this mem-bound custom call.
    flops = 4 * padded_b * S * D + 8 * padded_b * S
    transcendentals = padded_b * S
    bytes_accessed = sum(int(x.size) * 4 for x in inputs)
    bytes_accessed += (2 * padded_b * S + padded_b * D) * 4
    cost = pl.CostEstimate(flops=int(flops),
                           transcendentals=int(transcendentals),
                           bytes_accessed=int(bytes_accessed))

    alphas, summary, scores = pl.pallas_call(
        kernel,
        out_shape=out_shape,
        grid_spec=pltpu.PrefetchScalarGridSpec(
            num_scalar_prefetch=0,
            grid=(num_tiles,),
            in_specs=in_specs,
            out_specs=out_specs,
        ),
        compiler_params=pltpu.CompilerParams(
            dimension_semantics=("parallel",),
            vmem_limit_bytes=_VMEM_LIMIT_BYTES,
        ),
        cost_estimate=cost,
    )(*inputs)

    if pad:
        alphas, summary, scores = alphas[:B], summary[:B], scores[:B]
    return alphas, summary, scores


def _reference(qry, ctx, ctx_mask=None, parent_alphas=None, values=None,
               renormalize=False):
    if values is None:
        values = ctx
    scores = jnp.einsum('bd,bsd->bs', qry, ctx)
    if ctx_mask is not None:
        scores = scores + jnp.log(ctx_mask)
    alphas = jax.nn.softmax(scores, axis=-1)
    if parent_alphas is not None:
        alphas = jnp.minimum(parent_alphas, alphas)
    if renormalize:
        alphas = alphas / jnp.sum(alphas, axis=-1, keepdims=True)
    summary = jnp.einsum('bs,bsd->bd', alphas, values)
    return alphas, summary, scores


if __name__ == "__main__":
    # --- Test 1: small shapes, values=None (ctx reused inside the kernel),
    # first decode step (all-ones parent), a couple of masked positions. ------
    B, S, D = 2, 8, 32
    k_qry, k_ctx = jax.random.split(jax.random.PRNGKey(0))
    qry = jax.random.normal(k_qry, (B, D), dtype=jnp.float32)
    ctx = jax.random.normal(k_ctx, (B, S, D), dtype=jnp.float32)
    ctx_mask = jnp.ones((B, S), jnp.float32).at[0, S - 2:].set(0.0)
    parent_alphas = jnp.ones((B, S), jnp.float32)

    alphas, summary, scores = phrase_attention(qry, ctx, ctx_mask, parent_alphas)
    jax.block_until_ready((alphas, summary, scores))
    a_r, su_r, sc_r = _reference(qry, ctx, ctx_mask, parent_alphas)
    np.testing.assert_allclose(np.asarray(scores), np.asarray(sc_r),
                               rtol=1e-3, atol=1e-3)
    np.testing.assert_allclose(np.asarray(alphas), np.asarray(a_r),
                               rtol=2e-3, atol=2e-3)
    np.testing.assert_allclose(np.asarray(summary), np.asarray(su_r),
                               rtol=2e-3, atol=2e-3)

    # --- Test 2: multi-tile grid (batch tile forced to 8 -> padding + 3 grid
    # steps), separate values, non-trivial parent alphas, renormalize=True. ---
    B2, S2, D2 = 20, 128, 64
    ks = jax.random.split(jax.random.PRNGKey(0), 5)
    qry2 = jax.random.normal(ks[0], (B2, D2), dtype=jnp.float32)
    ctx2 = jax.random.normal(ks[1], (B2, S2, D2), dtype=jnp.float32)
    values2 = jax.random.normal(ks[2], (B2, S2, D2), dtype=jnp.float32)
    mask2 = (jax.random.uniform(ks[3], (B2, S2)) > 0.25).astype(jnp.float32)
    mask2 = mask2.at[:, 0].set(1.0)   # keep at least one live position per row
    parent2 = jax.nn.softmax(jax.random.normal(ks[4], (B2, S2)), axis=-1)

    a2, su2, sc2 = phrase_attention(qry2, ctx2, mask2, parent2, values=values2,
                                    renormalize=True, max_batch_tile=8)
    jax.block_until_ready((a2, su2, sc2))
    a2r, su2r, sc2r = _reference(qry2, ctx2, mask2, parent2, values=values2,
                                 renormalize=True)
    np.testing.assert_allclose(np.asarray(sc2), np.asarray(sc2r),
                               rtol=1e-3, atol=1e-3)
    np.testing.assert_allclose(np.asarray(a2), np.asarray(a2r),
                               rtol=2e-3, atol=2e-3)
    np.testing.assert_allclose(np.asarray(su2), np.asarray(su2r),
                               rtol=2e-3, atol=2e-3)

    print("KERNEL_OK")
</pallas_src>

<mosaic_0001>
module attributes {stable_mosaic.version = 11 : i64} {
  func.func @_phrase_attention_kernel(%arg0: i32, %arg1: memref<2x32xf32, #tpu.memory_space<vmem>>, %arg2: memref<2x8x32xf32, #tpu.memory_space<vmem>>, %arg3: memref<2x8xf32, #tpu.memory_space<vmem>>, %arg4: memref<2x8xf32, #tpu.memory_space<vmem>>, %arg5: memref<2x8xf32, #tpu.memory_space<vmem>>, %arg6: memref<2x32xf32, #tpu.memory_space<vmem>>, %arg7: memref<2x8xf32, #tpu.memory_space<vmem>>) attributes {dimension_semantics = [#tpu.dimension_semantics<parallel>], iteration_bounds = array<i64: 1>, scalar_prefetch = 0 : i64, scratch_operands = 0 : i64, tpu.core_type = #tpu.core_type<tc>, window_params = [{transform_indices = @transform_0, window_bounds = array<i64: 2, 32>}, {transform_indices = @transform_1, window_bounds = array<i64: 2, 8, 32>}, {transform_indices = @transform_2, window_bounds = array<i64: 2, 8>}, {transform_indices = @transform_3, window_bounds = array<i64: 2, 8>}, {transform_indices = @transform_4, window_bounds = array<i64: 2, 8>}, {transform_indices = @transform_5, window_bounds = array<i64: 2, 32>}, {transform_indices = @transform_6, window_bounds = array<i64: 2, 8>}]} {
    %c0 = arith.constant 0 : index
    %c0_0 = arith.constant 0 : index
    %0 = vector.load %arg1[%c0, %c0_0] : memref<2x32xf32, #tpu.memory_space<vmem>>, vector<1x32xf32>
    %c0_1 = arith.constant 0 : index
    %c0_2 = arith.constant 0 : index
    %c0_3 = arith.constant 0 : index
    %1 = vector.load %arg2[%c0_1, %c0_2, %c0_3] : memref<2x8x32xf32, #tpu.memory_space<vmem>>, vector<1x8x32xf32>
    %2 = vector.shape_cast %1 : vector<1x8x32xf32> to vector<8x32xf32>
    %cst = arith.constant dense<0.000000e+00> : vector<1x8xf32>
    %3 = tpu.matmul %0, %2, %cst {dimension_numbers = #tpu.dot_dimension_numbers<[1], [1], [0], [0], [0, 0, 1, 0], [], []>} : vector<1x32xf32>, vector<8x32xf32>, vector<1x8xf32> -> vector<1x8xf32>
    %c0_4 = arith.constant 0 : index
    %c0_5 = arith.constant 0 : index
    %4 = vector.load %arg7[%c0_4, %c0_5] : memref<2x8xf32, #tpu.memory_space<vmem>>, vector<1x8xf32>
    tpu.vector_store %arg7[%c0_4, %c0_5], %3 {strides = array<i32>} : memref<2x8xf32, #tpu.memory_space<vmem>>, vector<1x8xf32>,
    %c1 = arith.constant 1 : index
    %c0_6 = arith.constant 0 : index
    %5 = vector.load %arg1[%c1, %c0_6] : memref<2x32xf32, #tpu.memory_space<vmem>>, vector<1x32xf32>
    %c1_7 = arith.constant 1 : index
    %c0_8 = arith.constant 0 : index
    %c0_9 = arith.constant 0 : index
    %6 = vector.load %arg2[%c1_7, %c0_8, %c0_9] : memref<2x8x32xf32, #tpu.memory_space<vmem>>, vector<1x8x32xf32>
    %7 = vector.shape_cast %6 : vector<1x8x32xf32> to vector<8x32xf32>
    %cst_10 = arith.constant dense<0.000000e+00> : vector<1x8xf32>
    %8 = tpu.matmul %5, %7, %cst_10 {dimension_numbers = #tpu.dot_dimension_numbers<[1], [1], [0], [0], [0, 0, 1, 0], [], []>} : vector<1x32xf32>, vector<8x32xf32>, vector<1x8xf32> -> vector<1x8xf32>
    %c1_11 = arith.constant 1 : index
    %c0_12 = arith.constant 0 : index
    %9 = vector.load %arg7[%c1_11, %c0_12] : memref<2x8xf32, #tpu.memory_space<vmem>>, vector<1x8xf32>
    tpu.vector_store %arg7[%c1_11, %c0_12], %8 {strides = array<i32>} : memref<2x8xf32, #tpu.memory_space<vmem>>, vector<1x8xf32>,
    %c0_13 = arith.constant 0 : index
    %c0_14 = arith.constant 0 : index
    %10 = vector.load %arg7[%c0_13, %c0_14] : memref<2x8xf32, #tpu.memory_space<vmem>>, vector<2x8xf32>
    %c0_15 = arith.constant 0 : index
    %c0_16 = arith.constant 0 : index
    %11 = vector.load %arg3[%c0_15, %c0_16] : memref<2x8xf32, #tpu.memory_space<vmem>>, vector<2x8xf32>
    %cst_17 = arith.constant 0.000000e+00 : f32
    %12 = vector.broadcast %cst_17 : f32 to vector<2x8xf32>
    %13 = arith.cmpf ogt, %11, %12 : vector<2x8xf32>
    %cst_18 = arith.constant 0xFF800000 : f32
    %14 = vector.broadcast %cst_18 : f32 to vector<2x8xf32>
    %15 = arith.select %13, %10, %14 : vector<2x8xi1>, vector<2x8xf32>
    %c0_19 = arith.constant 0 : index
    %c0_20 = arith.constant 0 : index
    %16 = vector.load %arg7[%c0_19, %c0_20] : memref<2x8xf32, #tpu.memory_space<vmem>>, vector<2x8xf32>
    tpu.vector_store %arg7[%c0_19, %c0_20], %15 {strides = array<i32>} : memref<2x8xf32, #tpu.memory_space<vmem>>, vector<2x8xf32>,
    %cst_21 = arith.constant dense<0xFF800000> : vector<2xf32>
    %17 = vector.multi_reduction <maximumf>, %15, %cst_21 [1] : vector<2x8xf32> to vector<2xf32>
    %18 = vector.shape_cast %17 : vector<2xf32> to vector<2x1xf32>
    %19 = vector.broadcast %18 : vector<2x1xf32> to vector<2x8xf32>
    %20 = arith.subf %15, %19 : vector<2x8xf32>
    %21 = math.exp %20 : vector<2x8xf32>
    %cst_22 = arith.constant dense<0.000000e+00> : vector<2xf32>
    %22 = vector.multi_reduction <add>, %21, %cst_22 [1] : vector<2x8xf32> to vector<2xf32>
    %23 = vector.shape_cast %22 : vector<2xf32> to vector<2x1xf32>
    %24 = tpu.reciprocal %23 {approx = true} : vector<2x1xf32> -> vector<2x1xf32>
    %25 = vector.broadcast %24 : vector<2x1xf32> to vector<2x8xf32>
    %26 = arith.mulf %21, %25 : vector<2x8xf32>
    %c0_23 = arith.constant 0 : index
    %c0_24 = arith.constant 0 : index
    %27 = vector.load %arg4[%c0_23, %c0_24] : memref<2x8xf32, #tpu.memory_space<vmem>>, vector<2x8xf32>
    %28 = arith.minimumf %27, %26 : vector<2x8xf32>
    %c0_25 = arith.constant 0 : index
    %c0_26 = arith.constant 0 : index
    %29 = vector.load %arg5[%c0_25, %c0_26] : memref<2x8xf32, #tpu.memory_space<vmem>>, vector<2x8xf32>
    tpu.vector_store %arg5[%c0_25, %c0_26], %28 {strides = array<i32>} : memref<2x8xf32, #tpu.memory_space<vmem>>, vector<2x8xf32>,
    %c0_27 = arith.constant 0 : index
    %c0_28 = arith.constant 0 : index
    %30 = vector.load %arg5[%c0_27, %c0_28] : memref<2x8xf32, #tpu.memory_space<vmem>>, vector<1x8xf32>
    %c0_29 = arith.constant 0 : index
    %c0_30 = arith.constant 0 : index
    %c0_31 = arith.constant 0 : index
    %31 = vector.load %arg2[%c0_29, %c0_30, %c0_31] : memref<2x8x32xf32, #tpu.memory_space<vmem>>, vector<1x8x32xf32>
    %32 = vector.shape_cast %31 : vector<1x8x32xf32> to vector<8x32xf32>
    %cst_32 = arith.constant dense<0.000000e+00> : vector<1x32xf32>
    %33 = tpu.matmul %30, %32, %cst_32 {dimension_numbers = #tpu.dot_dimension_numbers<[1], [0], [0], [1], [0, 0, 1, 1], [], []>} : vector<1x8xf32>, vector<8x32xf32>, vector<1x32xf32> -> vector<1x32xf32>
    %c0_33 = arith.constant 0 : index
    %c0_34 = arith.constant 0 : index
    %34 = vector.load %arg6[%c0_33, %c0_34] : memref<2x32xf32, #tpu.memory_space<vmem>>, vector<1x32xf32>
    tpu.vector_store %arg6[%c0_33, %c0_34], %33 {strides = array<i32>} : memref<2x32xf32, #tpu.memory_space<vmem>>, vector<1x32xf32>,
    %c1_35 = arith.constant 1 : index
    %c0_36 = arith.constant 0 : index
    %35 = vector.load %arg5[%c1_35, %c0_36] : memref<2x8xf32, #tpu.memory_space<vmem>>, vector<1x8xf32>
    %c1_37 = arith.constant 1 : index
    %c0_38 = arith.constant 0 : index
    %c0_39 = arith.constant 0 : index
    %36 = vector.load %arg2[%c1_37, %c0_38, %c0_39] : memref<2x8x32xf32, #tpu.memory_space<vmem>>, vector<1x8x32xf32>
    %37 = vector.shape_cast %36 : vector<1x8x32xf32> to vector<8x32xf32>
    %cst_40 = arith.constant dense<0.000000e+00> : vector<1x32xf32>
    %38 = tpu.matmul %35, %37, %cst_40 {dimension_numbers = #tpu.dot_dimension_numbers<[1], [0], [0], [1], [0, 0, 1, 1], [], []>} : vector<1x8xf32>, vector<8x32xf32>, vector<1x32xf32> -> vector<1x32xf32>
    %c1_41 = arith.constant 1 : index
    %c0_42 = arith.constant 0 : index
    %39 = vector.load %arg6[%c1_41, %c0_42] : memref<2x32xf32, #tpu.memory_space<vmem>>, vector<1x32xf32>
    tpu.vector_store %arg6[%c1_41, %c0_42], %38 {strides = array<i32>} : memref<2x32xf32, #tpu.memory_space<vmem>>, vector<1x32xf32>,
    return
  }
  func.func @transform_0(%arg0: i32) -> (i32, i32) {
    %c0_i32 = arith.constant 0 : i32
    %c0_i32_0 = arith.constant 0 : i32
    return %arg0, %c0_i32 : i32, i32
  }
  func.func @transform_1(%arg0: i32) -> (i32, i32, i32) {
    %c0_i32 = arith.constant 0 : i32
    %c0_i32_0 = arith.constant 0 : i32
    %c0_i32_1 = arith.constant 0 : i32
    return %arg0, %c0_i32, %c0_i32_0 : i32, i32, i32
  }
  func.func @transform_2(%arg0: i32) -> (i32, i32) {
    %c0_i32 = arith.constant 0 : i32
    %c0_i32_0 = arith.constant 0 : i32
    return %arg0, %c0_i32 : i32, i32
  }
  func.func @transform_3(%arg0: i32) -> (i32, i32) {
    %c0_i32 = arith.constant 0 : i32
    %c0_i32_0 = arith.constant 0 : i32
    return %arg0, %c0_i32 : i32, i32
  }
  func.func @transform_4(%arg0: i32) -> (i32, i32) {
    %c0_i32 = arith.constant 0 : i32
    %c0_i32_0 = arith.constant 0 : i32
    return %arg0, %c0_i32 : i32, i32
  }
  func.func @transform_5(%arg0: i32) -> (i32, i32) {
    %c0_i32 = arith.constant 0 : i32
    %c0_i32_0 = arith.constant 0 : i32
    return %arg0, %c0_i32 : i32, i32
  }
  func.func @transform_6(%arg0: i32) -> (i32, i32) {
    %c0_i32 = arith.constant 0 : i32
    %c0_i32_0 = arith.constant 0 : i32
    return %arg0, %c0_i32 : i32, i32
  }
}

</mosaic_0001>

<bundles_post_ra>
// kernel: tpu_custom_call.1
= control target key start
LH: loop header
LB: loop body
LE: loop exit
PB: predicated region body
PF: predicated region fallthrough
CT: control target
= control target key end

     0   :  { %12 = vsyncpa [#allocation3], 0  ;;  %s654_s0 = inlined_call_operand.hbm [shape: f32[2,32], index: 0, kind: input, shape index: {}]   ;;  %s655_s1 = inlined_call_operand.hbm [shape: f32[2,8,32], index: 1, kind: input, shape index: {}]   ;;  %s656_s2 = inlined_call_operand.vmem [shape: f32[2,8], index: 2, kind: input, shape index: {}]   ;;  %s657_s3 = inlined_call_operand.vmem [shape: f32[2,8], index: 3, kind: input, shape index: {}]   ;;  %s658_s4 = inlined_call_operand.hbm [shape: f32[2,8], index: 4, kind: output, shape index: {0}]   ;;  %s659_s5 = inlined_call_operand.hbm [shape: f32[2,32], index: 5, kind: output, shape index: {1}]   ;;  %s660_s6 = inlined_call_operand.hbm [shape: f32[2,8], index: 6, kind: output, shape index: {2}]  }
   0x1   :  { %13 = vsyncpa [#allocation6], 0 }
   0x2   :  { %14 = vsyncpa [#allocation4], 0 }
   0x3   :  { %15 = vsyncpa [#allocation9], 0  ;;  %s581_s21 = smov [#allocation2]   ;;  %s582_s23 = smov [#allocation5]  }
   0x4   :  { %s22_s22 = sshll.u32 %s581_s21, 4  ;;  %s31_s24 = sshll.u32 %s582_s23, 4  ;;  %s23_s22 = int_to_ptr.vmem [resolvable:$true] %s22_s22  ;;  %s32_s24 = int_to_ptr.vmem [resolvable:$true] %s31_s24 }
   0x5   :  { %s481_s25 = scalar_lea.vmem %s23_s22, 32  ;;  %p486_p1 = scmp.lt.s32.totalorder %s23_s22, %s23_s22 }
   0x6   :  { %p482_p0 = scmp.ne.s32.totalorder %s23_s22, %s481_s25  ;;  %p487_p2 = scmp.lt.s32.totalorder %s481_s25, %s481_s25 }
   0x8   :  { %p488_p3 = por %p487_p2, %p486_p1 }
   0xa   :  { %p489_p4 = pnand %p488_p3, %p482_p0 }
   0xc   :  { %492 = shalt.err (!%p489_p4)
}
   0xd   :  { %25 = dma.hbm_to_vmem [thread:$0]  %s654_s0, 32, %s23_s22, [#allocation3]  }
   0xe   :  { %s501_s28 = scalar_lea.vmem %s32_s24, 256  ;;  %p506_p6 = scmp.lt.s32.totalorder %s32_s24, %s32_s24 }
   0xf   :  { %p502_p5 = scmp.ne.s32.totalorder %s32_s24, %s501_s28  ;;  %p507_p7 = scmp.lt.s32.totalorder %s501_s28, %s501_s28 }
  0x11   :  { %p508_p8 = por %p507_p7, %p506_p6 }
  0x13   :  { %p509_p9 = pnand %p508_p8, %p502_p5 }
  0x15   :  { %512 = shalt.err (!%p509_p9)
}
  0x16   :  { %s583_s29 = smov 128   ;;  %s584_s30 = smov 8  }
  0x17   :  { %37 = dma.hbm_to_vmem [thread:$0]  %s655_s1, 256, %s32_s24, [#allocation6], %s583_s29, %s583_s29, %s584_s30  }
  0x18   :  { %573 = dma.done.wait [#allocation3], 32  }
  0x19   :  { %574 = vsyncadd [#allocation3], 4294967264 }
  0x1a   :  { %575 = dma.done.wait [#allocation6], 256  }
  0x1b   :  { %576 = vsyncadd [#allocation6], 4294967040  ;;  %v585_v0 = vmov 0.0   ;;  %vm586_vm0 = vmmov 0   ;;  %vm50_vm1 = vcmask 261120   ;;  %v49_v1 = vld [vmem:[#allocation5] sm:$0xff] }
  0x1c   :  { %440 = vmatprep.subr.mxu0 %v585_v0  ;;  %445 = vmatprep.subr.mxu1 %v585_v0  ;;  %v131_v2 = vld [vmem:[#allocation5 + $0x8] sm:$0xff]  ;;  %v48_v3 = vld [vmem:[#allocation2] sm:$0x1]  ;;  %v129_v4 = vld [vmem:[#allocation2 + $0x1] sm:$0x1]  ;;  %vm127_vm2 = vcmask 57344  }
  0x1d   :  { %442 = vmatprep.mubr.msk.f32.mxu0 %vm586_vm0, %v585_v0  ;;  %447 = vmatprep.mubr.msk.f32.mxu1 %vm586_vm0, %v585_v0  ;;  %v210_v9 = vld [vmem:[%s656_s2] sm:$0x3]  ;;  %vm213_vm4 = vcmask 58368   ;;  %vm231_vm5 = vcmask 64512   ;;  %s587_s10 = smov [#allocation7]  }
  0x1e   :  { %441 = vmatpush3.xpose.msk.msra.mxu0 %vm50_vm1, %v49_v1  ;;  %446 = vmatpush3.xpose.msk.msra.mxu1 %vm50_vm1, %v131_v2  ;;  %vm211_vm3 = vcmp.gt.f32.partialorder %v210_v9, 0.0  ;;  %v226_v20 = vld [vmem:[%s657_s3] sm:$0x3]  ;;  %s389_s11 = sshll.u32 %s587_s10, 4  ;;  %s390_s11 = int_to_ptr.vmem [resolvable:$true] %s389_s11 }
  0x1f   :  { %450 = vmatprep.subr.mxu0 %v585_v0  ;;  %455 = vmatprep.subr.mxu1 %v585_v0  ;;  %s513_s12 = scalar_lea.vmem %s390_s11, 32  ;;  %p518_p11 = scmp.lt.s32.totalorder %s390_s11, %s390_s11 }
  0x20   :  { %p514_p10 = scmp.ne.s32.totalorder %s390_s11, %s513_s12  ;;  %p519_p12 = scmp.lt.s32.totalorder %s513_s12, %s513_s12 }
  0x21   :  { %443 = vmatmul.mubr.msk.f32.vlgmr.msra.gmra.mxu0 %vm50_vm1, %v48_v3  ;;  %448 = vmatmul.mubr.msk.f32.vlgmr.msra.gmra.mxu1 %vm50_vm1, %v129_v4 }
  0x22   :  { %451 = vmatpush3.msra.mxu0 %v49_v1  ;;  %456 = vmatpush3.msra.mxu1 %v131_v2  ;;  %p520_p13 = por %p519_p12, %p518_p11 }
  0x23   :  { %452 = vmatprep.mubr.msk.f32.mxu0 %vm586_vm0, %v585_v0  ;;  %457 = vmatprep.mubr.msk.f32.mxu1 %vm586_vm0, %v585_v0 }
  0x24   :  { %p521_p0 = pnand %p520_p13, %p514_p10 }
  0xe1   :  { %v123_v5 = vpop.f32.mrf.mxu0  ;;  %v204_v6 = vpop.f32.mrf.mxu1 }
  0xe2   :  { %128 = vst.msk [vmem:[#allocation10] sm:$0x1] %vm127_vm2, %v123_v5  ;;  %208 = vst.msk [vmem:[#allocation10 + $0x1] sm:$0x1] %vm127_vm2, %v204_v6 }
  0xe3   :  { %v444_v7 = vpop.f32.mrf.mxu0  ;;  %v449_v8 = vpop.f32.mrf.mxu1 }
  0xe9   :  { %v209_v10 = vld [vmem:[#allocation10] sm:$0x3] }
  0xea   :  { %v212_v11 = vsel %vm211_vm3, %v209_v10, -inf }
  0xeb   :  { %v215_v12 = vsel %vm213_vm4, %v212_v11, -inf  ;;  %214 = vst.msk [vmem:[#allocation10] sm:$0x3] %vm213_vm4, %v212_v11 }
  0xec   :  { %216 = vmax.xlane.f32.xlu0 %v215_v12 }
 0x175   :  { %v217_v13 = vpop.xlane.xlu0 %216 }
 0x176   :  { %v218_v14 = vsub.f32 %v212_v11, %v217_v13 }
 0x178   :  { %v219_v15 = vmul.f32 1.442695, %v218_v14 }
 0x17a   :  { %469 = vpow2.f32 %v219_v15 }
 0x187   :  { %v470_v16 = vpop.eup %469 }
 0x188   :  { %v221_v17 = vsel %vm213_vm4, %v470_v16, 0.0 }
 0x189   :  { %222 = vadd.xlane.f32.xlu0 %v221_v17 }
 0x212   :  { %v223_v18 = vpop.xlane.xlu0 %222 }
 0x213   :  { %471 = vrcp.f32 %v223_v18 }
 0x220   :  { %v472_v19 = vpop.eup %471 }
 0x221   :  { %v225_v21 = vmul.f32 %v472_v19, %v470_v16 }
 0x223   :  { %v227_v22 = vmin.f32 %v226_v20, %v225_v21 }
 0x225   :  { %228 = vst.msk [vmem:[#allocation7] sm:$0x3] %vm213_vm4, %v227_v22 }
 0x22c   :  { %v229_v23 = vld [vmem:[#allocation7] sm:$0x1]  ;;  %v307_v24 = vld [vmem:[#allocation7 + $0x1] sm:$0x1] }
 0x22d   :  { %453 = vmatmul.mubr.msk.f32.vlgmr.msra.gmra.mxu0 %vm231_vm5, %v229_v23  ;;  %458 = vmatmul.mubr.msk.f32.vlgmr.msra.gmra.mxu1 %vm231_vm5, %v307_v24 }
 0x22e   :  { %524 = shalt.err (!%p521_p0)
}
 0x22f   :  { %392 = dma.vmem_to_hbm [thread:$0]  %s390_s11, 32, %s658_s4, [#allocation4]   ;;  %vm305_vm6 = vcmask 253952  }
 0x230   :  { %s588_s14 = smov [#allocation8]   ;;  %s589_s16 = smov [#allocation10]  }
 0x231   :  { %s399_s15 = sshll.u32 %s588_s14, 4  ;;  %s409_s17 = sshll.u32 %s589_s16, 4  ;;  %s400_s15 = int_to_ptr.vmem [resolvable:$true] %s399_s15  ;;  %s410_s17 = int_to_ptr.vmem [resolvable:$true] %s409_s17 }
 0x232   :  { %s533_s18 = scalar_lea.vmem %s400_s15, 32  ;;  %p538_p2 = scmp.lt.s32.totalorder %s400_s15, %s400_s15 }
 0x233   :  { %p534_p1 = scmp.ne.s32.totalorder %s400_s15, %s533_s18  ;;  %p539_p3 = scmp.lt.s32.totalorder %s533_s18, %s533_s18 }
 0x235   :  { %p540_p4 = por %p539_p3, %p538_p2 }
 0x237   :  { %p541_p5 = pnand %p540_p4, %p534_p1 }
 0x2ed   :  { %v301_v25 = vpop.f32.mrf.mxu0  ;;  %v378_v26 = vpop.f32.mrf.mxu1 }
 0x2ee   :  { %306 = vst.msk [vmem:[#allocation8] sm:$0x1] %vm305_vm6, %v301_v25  ;;  %382 = vst.msk [vmem:[#allocation8 + $0x1] sm:$0x1] %vm305_vm6, %v378_v26 }
 0x2ef   :  { %v454_v27 = vpop.f32.mrf.mxu0  ;;  %v459_v28 = vpop.f32.mrf.mxu1 }
 0x2f0   :  { %544 = shalt.err (!%p541_p5)
}
 0x2f1   :  { %402 = dma.vmem_to_hbm [thread:$0]  %s400_s15, 32, %s659_s5, [#allocation9]  }
 0x2f2   :  { %s553_s20 = scalar_lea.vmem %s410_s17, 32  ;;  %p558_p7 = scmp.lt.s32.totalorder %s410_s17, %s410_s17 }
 0x2f3   :  { %p554_p6 = scmp.ne.s32.totalorder %s410_s17, %s553_s20  ;;  %p559_p8 = scmp.lt.s32.totalorder %s553_s20, %s553_s20 }
 0x2f5   :  { %p560_p9 = por %p559_p8, %p558_p7 }
 0x2f7   :  { %p561_p10 = pnand %p560_p9, %p554_p6 }
 0x2f9   :  { %564 = shalt.err (!%p561_p10)
}
 0x2fa   :  { %412 = dma.vmem_to_hbm [thread:$0]  %s410_s17, 32, %s660_s6, [#allocation9]  }
 0x2fb   :  { %577 = dma.done.wait [#allocation4], 32  }
 0x2fc   :  { %578 = vsyncadd [#allocation4], 4294967264 }
 0x2fd   :  { %579 = dma.done.wait [#allocation9], 64  }
 0x2fe   :  { %580 = vsyncadd [#allocation9], 4294967232 }
 0x2ff   :  { %422 = vsyncpa [#allocation3], 1 }
 0x300   :  { %423 = vsyncpa [#allocation6], 1 }
 0x301   :  { %424 = vsyncpa [#allocation4], 1 }
 0x302   :  { %425 = vsyncpa [#allocation9], 1 }

</bundles_post_ra>
